<compile_context>
chip_gen: v7x
topology: tpu7x:2x2x1
jax: 0.10.0
libtpu: 0.0.40
codegen_flags: <defaults>
</compile_context>

<pallas_src>
import jax
import jax.numpy as jnp
import numpy as np
from jax.experimental import pallas as pl
from jax.experimental.pallas import tpu as pltpu


def _round_up(x, m):
    return ((x + m - 1) // m) * m


def feat_embedding_kernel(idx_ref, wbd_ref, out_ref):
    """One token tile.

    idx_ref: (TM, NC)        int32  per-category ids already offset by c*Vpad;
                                    -1 for padded rows (never matches).
    wbd_ref: (NC*Vpad, NC*D)        block-diagonal embedding table (resident).
    out_ref: (TM, NC*D)             lane-dense output slab.
    """
    tm, nc = idx_ref.shape
    k_dim = wbd_ref.shape[0]                                  # NC * Vpad

    idx = idx_ref[...]                                        # (TM, NC) int32
    iota_k = jax.lax.broadcasted_iota(jnp.int32, (tm, k_dim), 1)

    # One-hot over the block-diagonal column space.  NC is tiny -> static
    # unroll; the per-category hit sets are disjoint so OR-ing is exact.
    hit = idx[:, 0:1] == iota_k
    for c in range(1, nc):
        hit = hit | (idx[:, c : c + 1] == iota_k)
    one_hot = hit.astype(wbd_ref.dtype)                       # (TM, NC*Vpad)

    # Single MXU matmul: the result is already the flattened (TM, NC*D) slab.
    # Each output element receives exactly one nonzero product (1.0 * w), so
    # with f32 accumulation the gather is exact w.r.t. the table dtype, and
    # padded rows (all-zero one-hot) come out as exact zeros.
    slab = jnp.dot(one_hot, wbd_ref[...], preferred_element_type=jnp.float32)
    out_ref[...] = slab.astype(out_ref.dtype)                 # one full-width store


def feat_embedding_forward(feature_matrix, c_idx, weight, padding=None, *,
                           tm_max=1024, table_dtype=jnp.bfloat16,
                           out_dtype=jnp.float32):
    """JAX wrapper reproducing FeatEmbedding.forward.

    feature_matrix: (B, L, C) int   — feature ids per category column
    c_idx:          (NC,)     int   — chosen category columns
    weight:         (V, D)    f32   — embedding table (num_features, embed_dim)
    padding:        (B, L)    bool  — True at padded positions (optional)
    returns:        (B, L, NC*D) out_dtype
    """
    B, L, _C = feature_matrix.shape
    V, D = weight.shape
    NC = int(c_idx.shape[0])

    Vpad = _round_up(V, 64)            # zero-padded vocab rows; K multiple of 128/256
    K = NC * Vpad
    ND = NC * D

    # ---- index preparation (tiny, wrapper-side) ---------------------------
    chosen = jnp.take(feature_matrix, c_idx, axis=2).astype(jnp.int32)   # (B,L,NC)
    offsets = (jnp.arange(NC, dtype=jnp.int32) * Vpad)[None, :]          # (1, NC)
    idx_off = chosen.reshape(B * L, NC) + offsets                        # (BL, NC)
    if padding is not None:
        # Padded rows -> -1: never matches any one-hot column -> exact zeros.
        idx_off = jnp.where(padding.reshape(B * L, 1), jnp.int32(-1), idx_off)

    # ---- block-diagonal table (built once, resident in VMEM) --------------
    w_pad = jnp.zeros((Vpad, D), table_dtype).at[:V].set(weight.astype(table_dtype))
    w_bd = jnp.kron(jnp.eye(NC, dtype=table_dtype), w_pad)               # (K, NC*D)

    # ---- tiling ------------------------------------------------------------
    BL = B * L
    # Large tiles amortize the ~0.35us per-grid-step pipeline overhead, but
    # keep >= 2 tiles so the "parallel" axis can feed both v7x TensorCores.
    TM = min(tm_max, max(8, _round_up(pl.cdiv(BL, 2), 8)))
    BLp = _round_up(BL, TM)
    if BLp != BL:
        idx_off = jnp.pad(idx_off, ((0, BLp - BL), (0, 0)), constant_values=-1)

    out_itemsize = jnp.dtype(out_dtype).itemsize
    tbl_itemsize = jnp.dtype(table_dtype).itemsize
    vmem_est = (2 * TM * NC * 4                    # idx double buffer
                + 2 * TM * ND * out_itemsize       # output double buffer
                + 2 * K * ND * tbl_itemsize        # resident table (2 bufs)
                + TM * K * tbl_itemsize            # one-hot intermediate
                + TM * ND * 4)                     # f32 matmul accumulator
    vmem_limit = int(min(max(2 * vmem_est, 32 * 1024 * 1024), 48 * 1024 * 1024))

    out2d = pl.pallas_call(
        feat_embedding_kernel,
        out_shape=jax.ShapeDtypeStruct((BLp, ND), out_dtype),
        grid_spec=pltpu.PrefetchScalarGridSpec(
            num_scalar_prefetch=0,
            grid=(BLp // TM,),
            in_specs=[
                pl.BlockSpec((TM, NC), lambda i: (i, 0)),    # offset ids tile
                pl.BlockSpec((K, ND), lambda i: (0, 0)),     # resident block-diag table
            ],
            out_specs=pl.BlockSpec((TM, ND), lambda i: (i, 0)),
        ),
        compiler_params=pltpu.CompilerParams(
            dimension_semantics=("parallel",),               # v7x: tiles split over 2 TCs
            vmem_limit_bytes=vmem_limit,
        ),
    )(idx_off, w_bd)

    return out2d[:BL].reshape(B, L, ND)


if __name__ == "__main__":
    key = jax.random.PRNGKey(0)
    k1, k2 = jax.random.split(key, 2)

    # Small shapes consistent with the module: batch=2, length=8, C=6 category
    # columns total, NC=4 chosen, vocab (num_features)=60, embed_dim=32 so
    # NC*D = 128 (lane-dense output slab).
    B, L, C = 2, 8, 6
    V, D = 60, 32
    c_idx = jnp.array([0, 2, 3, 5], dtype=jnp.int32)          # NC = 4 chosen categories
    NC = int(c_idx.shape[0])

    feature_matrix = jax.random.randint(k1, (B, L, C), 0, V, dtype=jnp.int32)
    weight = 0.1 * jax.random.normal(k2, (V, D), dtype=jnp.float32)
    # Padding: last 2 positions of the second sequence are padded.
    lengths = jnp.array([L, L - 2], dtype=jnp.int32)
    padding = jnp.arange(L, dtype=jnp.int32)[None, :] >= lengths[:, None]   # (B, L) bool

    out = feat_embedding_forward(feature_matrix, c_idx, weight, padding)
    out = jax.block_until_ready(out)

    # Pure-JAX reference against the same (intentionally) bf16-rounded table
    # the kernel consumes -> exact match expected; padding rows exactly zero.
    w_eff = weight.astype(jnp.bfloat16).astype(jnp.float32)
    chosen_ref = jnp.take(feature_matrix, c_idx, axis=2)
    ref = jnp.take(w_eff, chosen_ref, axis=0).reshape(B, L, NC * D)
    ref = jnp.where(padding[:, :, None], 0.0, ref)
    np.testing.assert_allclose(np.asarray(out), np.asarray(ref), rtol=0, atol=1e-6)

    print("KERNEL_OK")
</pallas_src>

<mosaic_0001>
module attributes {stable_mosaic.version = 11 : i64} {
  func.func @feat_embedding_kernel(%arg0: i32, %arg1: memref<8x4xi32, #tpu.memory_space<vmem>>, %arg2: memref<256x128xbf16, #tpu.memory_space<vmem>>, %arg3: memref<8x128xf32, #tpu.memory_space<vmem>>) attributes {dimension_semantics = [#tpu.dimension_semantics<parallel>], iteration_bounds = array<i64: 2>, scalar_prefetch = 0 : i64, scratch_operands = 0 : i64, tpu.core_type = #tpu.core_type<tc>, window_params = [{transform_indices = @transform_0, window_bounds = array<i64: 8, 4>}, {pipeline_mode = #tpu.pipeline_mode<synchronous>, transform_indices = @transform_1, window_bounds = array<i64: 256, 128>}, {transform_indices = @transform_2, window_bounds = array<i64: 8, 128>}]} {
    %c0 = arith.constant 0 : index
    %c0_0 = arith.constant 0 : index
    %0 = vector.load %arg1[%c0, %c0_0] : memref<8x4xi32, #tpu.memory_space<vmem>>, vector<8x4xi32>
    %1 = tpu.iota {dimensions = array<i32: 1>} : vector<8x256xi32>
    %2 = vector.extract_strided_slice %0 {offsets = [0, 0], sizes = [8, 1], strides = [1, 1]} : vector<8x4xi32> to vector<8x1xi32>
    %3 = vector.broadcast %2 : vector<8x1xi32> to vector<8x256xi32>
    %4 = arith.cmpi eq, %3, %1 : vector<8x256xi32>
    %5 = vector.extract_strided_slice %0 {offsets = [0, 1], sizes = [8, 1], strides = [1, 1]} : vector<8x4xi32> to vector<8x1xi32>
    %6 = vector.broadcast %5 : vector<8x1xi32> to vector<8x256xi32>
    %7 = arith.cmpi eq, %6, %1 : vector<8x256xi32>
    %8 = arith.ori %4, %7 : vector<8x256xi1>
    %9 = vector.extract_strided_slice %0 {offsets = [0, 2], sizes = [8, 1], strides = [1, 1]} : vector<8x4xi32> to vector<8x1xi32>
    %10 = vector.broadcast %9 : vector<8x1xi32> to vector<8x256xi32>
    %11 = arith.cmpi eq, %10, %1 : vector<8x256xi32>
    %12 = arith.ori %8, %11 : vector<8x256xi1>
    %13 = vector.extract_strided_slice %0 {offsets = [0, 3], sizes = [8, 1], strides = [1, 1]} : vector<8x4xi32> to vector<8x1xi32>
    %14 = vector.broadcast %13 : vector<8x1xi32> to vector<8x256xi32>
    %15 = arith.cmpi eq, %14, %1 : vector<8x256xi32>
    %16 = arith.ori %12, %15 : vector<8x256xi1>
    %17 = arith.extui %16 : vector<8x256xi1> to vector<8x256xi32>
    %18 = arith.sitofp %17 : vector<8x256xi32> to vector<8x256xf32>
    %19 = arith.truncf %18 : vector<8x256xf32> to vector<8x256xbf16>
    %c0_1 = arith.constant 0 : index
    %c0_2 = arith.constant 0 : index
    %20 = vector.load %arg2[%c0_1, %c0_2] : memref<256x128xbf16, #tpu.memory_space<vmem>>, vector<256x128xbf16>
    %cst = arith.constant dense<0.000000e+00> : vector<8x128xf32>
    %21 = tpu.matmul %19, %20, %cst {dimension_numbers = #tpu.dot_dimension_numbers<[1], [0], [0], [1], [0, 0, 1, 1], [], []>} : vector<8x256xbf16>, vector<256x128xbf16>, vector<8x128xf32> -> vector<8x128xf32>
    %c0_3 = arith.constant 0 : index
    %c0_4 = arith.constant 0 : index
    %22 = vector.load %arg3[%c0_3, %c0_4] : memref<8x128xf32, #tpu.memory_space<vmem>>, vector<8x128xf32>
    tpu.vector_store %arg3[%c0_3, %c0_4], %21 {strides = array<i32>} : memref<8x128xf32, #tpu.memory_space<vmem>>, vector<8x128xf32>,
    return
  }
  func.func @transform_0(%arg0: i32) -> (i32, i32) {
    %c0_i32 = arith.constant 0 : i32
    %c0_i32_0 = arith.constant 0 : i32
    return %arg0, %c0_i32 : i32, i32
  }
  func.func @transform_1(%arg0: i32) -> (i32, i32) {
    %c0_i32 = arith.constant 0 : i32
    %c0_i32_0 = arith.constant 0 : i32
    %c0_i32_1 = arith.constant 0 : i32
    return %c0_i32, %c0_i32_0 : i32, i32
  }
  func.func @transform_2(%arg0: i32) -> (i32, i32) {
    %c0_i32 = arith.constant 0 : i32
    %c0_i32_0 = arith.constant 0 : i32
    return %arg0, %c0_i32 : i32, i32
  }
}

</mosaic_0001>

<bundles_post_ra>
// kernel: tpu_custom_call.1
= control target key start
LH: loop header
LB: loop body
LE: loop exit
PB: predicated region body
PF: predicated region fallthrough
CT: control target
= control target key end

     0   :  { %7 = vsyncpa [#allocation3], 0  ;;  %s834_s0 = inlined_call_operand.vmem [shape: s32[16,4], index: 0, kind: input, shape index: {}]   ;;  %s835_s1 = inlined_call_operand.hbm [shape: bf16[256,128], index: 1, kind: input, shape index: {}]   ;;  %s836_s2 = inlined_call_operand.hbm [shape: f32[16,128], index: 2, kind: output, shape index: {}]  }
   0x1   :  { %8 = vsyncpa [#allocation4], 0 }
   0x2   :  { %10 = vsyncpa [#allocation4 + $0x1], 0  ;;  %s699_s9 = smov 0   ;;  %s701_s10 = smov 0  }
   0x3   :  { %s703_s11 = smov 0   ;;  %s705_s12 = smov 0  }
   0x4 LB: > { %s720_s13 = sadd.s32 4294967295, %s673_s12   ;;  %s445_s14 = sadd.s32 4294967294, %s673_s12   ;;  %s673_s12 = sphi %s705_s12, %s852_s12   ;;  %s669_s11 = sphi %s703_s11, %s851_s11   ;;  %s665_s10 = sphi %s701_s10, %s850_s10   ;;  %s661_s9 = sphi %s699_s9, %s849_s9  }
   0x5   : > { %s724_s15 = sadd.s32 1, %s673_s12   ;;  %s70_s16 = sadd.s32 1, %s669_s11 }
   0x6   : > { %s67_s17 = ssub.s32 %s673_s12, %s724_s15  ;;  %p80_p0 = scmp.ne.s32.totalorder %s669_s11, %s665_s10 }
   0x7   : > { %p68_p1 = scmp.eq.s32.totalorder %s67_s17, 0  ;;  %p81_p2 = scmp.eq.s32.totalorder %s720_s13, 1 }
   0x8   : > { %p86_p3 = scmp.ne.s32.totalorder %s665_s10, %s661_s9  ;;  %p87_p4 = scmp.eq.s32.totalorder %s445_s14, 1 }
   0x9   : > { %s735_s18 = scalar_select %p68_p1, %s669_s11, %s70_s16  }
   0xa   : > { %p737_p5 = por %p81_p2, %p80_p0  ;;  %p741_p6 = por %p87_p4, %p86_p3 }
   0xb   : > { %p446_p7 = scmp.ge.s32.totalorder %s673_s12, 1  ;;  %p94_p8 = scmp.lt.s32.totalorder %s673_s12, 3 }
   0xc   : > { %s840_s19 = scalar_select %p737_p5, 1, 0 }
   0xd   : > { %s841_s20 = scalar_select %p741_p6, 1, 0 }
   0xe   : > { %p837_p9 = scmp.eq.s32.totalorder %s720_s13, 0  ;;  %p748_p10 = pnand %p446_p7, %p94_p8 }
   0xf   : > { %s675_s22 = smov [#allocation2]   ;;  %s579_s27 = scalar_lea.hbm %s835_s1, 2048 }
  0x10   : > { %s842_s21 = scalar_select %p748_p10, 1, 0 }
  0x11   : > { %s106_s23 = sshll.u32 %s675_s22, 4  ;;  %p507_p11 = pneg %p748_p10  ;;  %s107_s23 = int_to_ptr.vmem [resolvable:$true] %s106_s23 }
  0x12   : > { %p580_p13 = scmp.ne.s32.totalorder %s835_s1, %s579_s27  ;;  %p586_p3 = scmp.lt.u32.totalorder %s579_s27, %s835_s1 }
  0x13   : > { %p756_p12 = pnand %p837_p9, %p507_p11 }
  0x15   : > { %p581_p0 = pneg %p756_p12 }
  0x17   : > { %p582_p1 = pnand %p581_p0, %p580_p13 }
  0x19   : > { %p583_p2 = pneg %p582_p1 }
  0x1b   : > { %p588_p4 = pnand %p586_p3, %p583_p2 }
  0x1d   : > { %591 = shalt.err (!%p588_p4)
}
  0x1e   : > { %s592_s4 = scalar_lea.vmem %s107_s23, 2048  ;;  %p600_p9 = scmp.lt.s32.totalorder %s107_s23, %s107_s23 }
  0x1f   : > { %p593_p7 = scmp.ne.s32.totalorder %s107_s23, %s592_s4  ;;  %p601_p6 = scmp.lt.s32.totalorder %s592_s4, %s592_s4 }
  0x21   : > { %p595_p8 = pnand %p593_p7, %p581_p0  ;;  %p602_p5 = por %p601_p6, %p600_p9 }
  0x23   : > { %p596_p11 = pneg %p595_p8 }
  0x25   : > { %p603_p10 = pnand %p602_p5, %p596_p11 }
  0x27   : > { %606 = shalt.err (!%p603_p10)
}
  0x28   : > { %s676_s5 = smov 64   ;;  %s677_s6 = smov 4  }
  0x29   : > { %510 = dma.hbm_to_vmem [thread:$0]  (!%p756_p12), %s835_s1, 2048, %s107_s23, [#allocation3], %s676_s5, %s676_s5, %s677_s6  }
  0x2a   : > { %p844_p13 = scmp.ne.s32.totalorder %s842_s21, 0 }
  0x2b   : > { %p845_p1 = scmp.eq.s32.totalorder (!%p844_p13), %s720_s13, 0 }
  0x2c   : > { %129 = sbr.rel (%p844_p13) target bundleno = 431 (0x1af), region = 28 }
  0x33   : > { %652 = dma.done.wait (%p845_p1), [#allocation3], 2048   ;;  %p846_p0 = pmov %p845_p1 }
  0x34   : > { %p150_p5 = scmp.lt.s32.totalorder %s720_s13, 1  ;;  %v678_v0 = vmov 0   ;;  %v679_v1 = vmov 2   ;;  %v563_v3 = vld [vmem:[#allocation2 + $0x40] sm:$0xff]   ;;  %v565_v5 = vld [vmem:[#allocation2 + $0x48] sm:$0xff]   ;;  %v680_v7 = vmov 1   ;;  %v156_v21 = vlaneseq }
  0x35   : > { %654 = vsyncadd (%p846_p0), [#allocation3], 4294965248  ;;  %558 = vset.pattern.permute.xlu0 %v678_v0  ;;  %560 = vset.pattern.permute.xlu1 %v679_v1  ;;  %v564_v4 = vld [vmem:[#allocation2] sm:$0xff]   ;;  %v566_v6 = vld [vmem:[#allocation2 + $0x8] sm:$0xff]   ;;  %v681_v8 = vmov 3   ;;  %s147_s23 = sand.u32 1, %s665_s10  }
  0x36   : > { %s151_s14 = scalar_select %p150_p5, %s720_s13, 1  ;;  %479 = vmatprep.subr.bf16.mxu0 %v563_v3  ;;  %v567_v9 = vld [vmem:[#allocation2 + $0x50] sm:$0xff]   ;;  %v569_v11 = vld [vmem:[#allocation2 + $0x58] sm:$0xff]   ;;  %v571_v13 = vld [vmem:[#allocation2 + $0x60] sm:$0xff]   ;;  %v157_v22 = vand.u32 127, %v156_v21 }
  0x37   : > { %480 = vmatpush3.bf16.msra.mxu0 %v564_v4  ;;  %v568_v10 = vld [vmem:[#allocation2 + $0x10] sm:$0xff]   ;;  %v570_v12 = vld [vmem:[#allocation2 + $0x18] sm:$0xff]   ;;  %v572_v14 = vld [vmem:[#allocation2 + $0x20] sm:$0xff]   ;;  %v682_v28 = vmov 1.0|1.0   ;;  %s451_s24 = sshll.u32 %s147_s23, 3 }
  0x38   : > { %s452_s16 = sshll.u32 %s151_s14, 3  ;;  %481 = vmatprep.subr.bf16.mxu0 %v565_v5  ;;  %v573_v15 = vld [vmem:[#allocation2 + $0x68] sm:$0xff]   ;;  %v575_v17 = vld [vmem:[#allocation2 + $0x70] sm:$0xff]   ;;  %v577_v19 = vld [vmem:[#allocation2 + $0x78] sm:$0xff]   ;;  %v158_v25 = vadd.s32 128, %v157_v22  ;;  %s476_s25 = sshll.u32 %s720_s13, 7 }
  0x39   : > { %s153_s21 = scalar_lea.vmem %s834_s0, %s452_s16  ;;  %v574_v16 = vld [vmem:[#allocation2 + $0x28] sm:$0xff]   ;;  %v576_v18 = vld [vmem:[#allocation2 + $0x30] sm:$0xff]   ;;  %v578_v20 = vld [vmem:[#allocation2 + $0x38] sm:$0xff]   ;;  %s149_s26 = scalar_lea.vmem [#allocation5], %s451_s24 }
  0x3a   : > { %v155_v2 = vld [vmem:[%s153_s21] sm:$0xff]  ;;  %s374_s27 = sshll.u32 %s149_s26, 4  ;;  %s792_s30 = scalar_lea.hbm %s836_s2, %s476_s25  ;;  %s794_s27 = int_to_ptr.vmem [resolvable:$true] %s374_s27 }
  0x3b   : > { %160 = vperm.xlu0 %558, %v155_v2   ;;  %172 = vperm.xlu1 %560, %v155_v2   ;;  %s361_s3 = scalar_lea.sflag [#allocation4], %s147_s23  ;;  %s607_s13 = scalar_lea.vmem %s794_s27, 128 }
  0x3c   : > { %482 = vmatpush3.bf16.msra.mxu0 %v566_v6  ;;  %p608_p6 = scmp.ne.s32.totalorder %s794_s27, %s607_s13  ;;  %p847_p9 = scmp.ne.s32.totalorder %s840_s19, 0 }
  0x3d   : > { %483 = vmatprep.subr.bf16.mxu0 %v567_v9  ;;  %s683_s4 = smov [#allocation5]  }
  0x3e   : > { %p609_p10 = pnand %p608_p6, %p847_p9  ;;  %s611_s5 = sshll.u32 %s683_s4, 4  ;;  %s612_s5 = int_to_ptr.vmem [resolvable:$false] %s611_s5 }
  0x3f   : > { %559 = vset.pattern.permute.xlu0 %v680_v7  ;;  %561 = vset.pattern.permute.xlu1 %v681_v8  ;;  %s613_s6 = scalar_lea.vmem %s612_s5, 256  ;;  %p614_p2 = scmp.lt.s32.totalorder %s794_s27, %s612_s5 }
  0x40   : > { %165 = vperm.xlu0 %559, %v155_v2   ;;  %179 = vperm.xlu1 %561, %v155_v2   ;;  %p610_p12 = pneg %p609_p10  ;;  %p615_p3 = scmp.lt.s32.totalorder %s613_s6, %s607_s13 }
  0x41   : > { %484 = vmatpush3.bf16.msra.mxu0 %v568_v10 }
  0x42   : > { %485 = vmatprep.subr.bf16.mxu0 %v569_v11  ;;  %p616_p4 = por %p615_p3, %p614_p2 }
  0x44   : > { %562 = vset.pattern.permute.xlu0 %v681_v8  ;;  %p617_p7 = pnand %p616_p4, %p610_p12 }
  0x45   : > { %486 = vmatpush3.bf16.msra.mxu0 %v570_v12 }
  0x46   : > { %487 = vmatprep.subr.bf16.mxu0 %v571_v13 }
  0x49   : > { %488 = vmatpush3.bf16.msra.mxu0 %v572_v14 }
  0x4a   : > { %489 = vmatprep.subr.bf16.mxu0 %v573_v15 }
  0x4d   : > { %490 = vmatpush3.bf16.msra.mxu0 %v574_v16 }
  0x4e   : > { %491 = vmatprep.subr.bf16.mxu0 %v575_v17 }
  0x51   : > { %492 = vmatpush3.bf16.msra.mxu0 %v576_v18 }
  0x52   : > { %493 = vmatprep.subr.bf16.mxu0 %v577_v19 }
  0x55   : > { %494 = vmatpush3.bf16.msra.mxu0 %v578_v20 }
  0xba   : > { %v161_v23 = vpop.permute.xlu0 %160  ;;  %v173_v24 = vpop.permute.xlu1 %172 }
  0xbb   : > { %vm162_vm0 = vcmp.eq.s32.totalorder %v161_v23, %v157_v22  ;;  %vm163_vm3 = vcmp.eq.s32.totalorder %v161_v23, %v158_v25  ;;  %vm174_vm6 = vcmp.eq.s32.totalorder %v173_v24, %v157_v22  ;;  %vm175_vm11 = vcmp.eq.s32.totalorder %v173_v24, %v158_v25 }
  0xbf   : > { %v166_v26 = vpop.permute.xlu0 %165  ;;  %v180_v27 = vpop.permute.xlu1 %179 }
  0xc0   : > { %vm167_vm1 = vcmp.eq.s32.totalorder %v166_v26, %v157_v22  ;;  %vm168_vm2 = vcmp.eq.s32.totalorder %v166_v26, %v158_v25  ;;  %vm181_vm5 = vcmp.eq.s32.totalorder %v180_v27, %v157_v22  ;;  %vm182_vm9 = vcmp.eq.s32.totalorder %v180_v27, %v158_v25 }
  0xc1   : > { %vm169_vm4 = vmor %vm162_vm0, %vm167_vm1 }
  0xc2   : > { %vm170_vm7 = vmor %vm163_vm3, %vm168_vm2 }
  0xc3   : > { %vm176_vm8 = vmor %vm169_vm4, %vm174_vm6 }
  0xc4   : > { %vm183_vm10 = vmor %vm176_vm8, %vm181_vm5 }
  0xc5   : > { %vm473_vm12 = vmpackc.low %vm183_vm10, %vm183_vm10 }
  0xc6   : > { %vm177_vm13 = vmor %vm170_vm7, %vm175_vm11 }
  0xc7   : > { %vm184_vm14 = vmor %vm177_vm13, %vm182_vm9 }
  0xc8   : > { %vm471_vm15 = vmpackc.low %vm184_vm14, %vm184_vm14 }
  0xc9   : > { %472 = vmatprep.mubr.msk.bf16.mxu0 %vm471_vm15, %v682_v28 }
  0xca   : > { %474 = vmatmul.mubr.msk.bf16.vlgmr.msra.gmra.mrb[0].mxu0 %vm473_vm12, %v682_v28 }
 0x19d   : > { %v495_v29 = vpop.f32.mrb[0].mxu0 }
 0x19e   : > { %v496_v30 = vpop.f32.mrb[1].mxu0 }
 0x19f   : > { %v497_v31 = vadd.f32 %v496_v30, %v495_v29  ;;  %v498_v32 = vpop.f32.mrb[2].mxu0 }
 0x1a0   : > { %v499_v33 = vpop.f32.mrb[3].mxu0 }
 0x1a1   : > { %359 = vst [vmem:[%s149_s26] sm:$0xff] %v497_v31 }
 0x1a2   : > { %620 = shalt.err (!%p617_p7)
}
 0x1a3   : > { %s621_s7 = scalar_lea.hbm %s792_s30, 128  ;;  %s625_s16 = scalar_lea.hbm %s836_s2, 256 }
 0x1a4   : > { %p622_p8 = scmp.ne.s32.totalorder %s792_s30, %s621_s7  ;;  %p626_p1 = scmp.lt.u32.totalorder %s792_s30, %s836_s2 }
 0x1a5   : > { %p627_p0 = scmp.lt.u32.totalorder %s625_s16, %s621_s7  ;;  %p629_p6 = scmp.lt.u32.totalorder %s621_s7, %s792_s30 }
 0x1a6   : > { %p623_p11 = pnand %p622_p8, %p847_p9 }
 0x1a7   : > { %p628_p5 = por %p627_p0, %p626_p1 }
 0x1a8   : > { %p624_p13 = pneg %p623_p11 }
 0x1a9   : > { %p630_p10 = por %p629_p6, %p628_p5 }
 0x1ab   : > { %p631_p12 = pnand %p630_p10, %p624_p13 }
 0x1ad   : > { %634 = shalt.err (!%p631_p12)
}
 0x1ae   : > { %505 = dma.vmem_to_hbm [thread:$0]  (%p847_p9), %s794_s27, 128, %s792_s30, %s361_s3  }
 0x1af PF: > { %p517_p2 = scmp.ge.s32.totalorder %s673_s12, 2  ;;  %s386_s21 = sand.u32 1, %s661_s9  }
 0x1b0   : > { %p848_p3 = scmp.ne.s32.totalorder %s841_s20, 0  ;;  %s387_s23 = scalar_lea.sflag [#allocation4], %s386_s21 }
 0x1b2   : > { %p512_p4 = pnand %p517_p2, %p848_p3 }
 0x1b4   : > { %656 = dma.done.wait (!%p512_p4), %s387_s23, 128  }
 0x1b5   : > { %658 = vsyncadd (!%p512_p4), %s387_s23, 4294967168  ;;  %p13_p7 = scmp.ge.s32.totalorder %s724_s15, 4   ;;  %s849_s9 = smov %s665_s10 }
 0x1b6   : > { %s850_s10 = smov %s669_s11  ;;  %s851_s11 = smov %s735_s18 }
 0x1b7   : > { %s852_s12 = smov %s724_s15  ;;  %15 = sbr.rel (!%p13_p7) target bundleno = 4 (0x4), region = 68 }
 0x1be   :  { %392 = vsyncpa [#allocation3], 1 }
 0x1bf   :  { %394 = vsyncpa [#allocation3 + $0x1], 1 }
 0x1c0   :  { %395 = vsyncpa [#allocation4], 1 }
 0x1c1   :  { %397 = vsyncpa [#allocation4 + $0x1], 1 }

</bundles_post_ra>
